<compile_context>
chip_gen: v5e
topology: v5e:2x2
jax: 0.10.0
libtpu: 0.0.40
codegen_flags: <defaults>
</compile_context>

<pallas_src>
import math

import jax
import jax.numpy as jnp
from jax.experimental import pallas as pl
from jax.experimental.pallas import tpu as pltpu

NEG_SLOPE = 9.1  # nn.LeakyReLU(negative_slope=9.1)


def _round_up(a, b):
    return (a + b - 1) // b * b


def net_kernel(x_ref, w1_ref, b1_ref, w2_ref, b2_ref, o_ref):
    # x_ref: (TM, D_in) f32 | w1_ref: (D_in, H) bf16 | b1_ref, w2_ref: (1, H) f32
    # b2_ref: (1, 1) f32 in SMEM | o_ref: (TM, 1) f32
    xb = x_ref[...].astype(jnp.bfloat16)  # in-kernel cast: hidden under the matmul
    h = jnp.dot(xb, w1_ref[...], preferred_element_type=jnp.float32)
    h = h + b1_ref[...]                                  # bias in f32
    # LeakyReLU(9.1): min(h, slope*h) is exact ONLY because NEG_SLOPE > 1.
    h = jnp.minimum(h, NEG_SLOPE * h)
    # Second Linear has D_out=1: VPU multiply + XLU lane reduction instead of an
    # N=1 MXU matmul that would waste 255/256 of the MXU output width.
    o = jnp.sum(h * w2_ref[...], axis=-1, keepdims=True) + b2_ref[0, 0]
    o_ref[...] = o.astype(o_ref.dtype)


def net_forward(x, w1, b1, w2, b2, *, tm=2048):
    """x: (B, S, D_in) float32, w1: (D_in, H), b1: (1, H), w2: (H, 1), b2: (1, 1).

    Returns (B, S, 1) float32.
    """
    # TODO(synk): Dropout(p=0.05) is stochastic in training mode; implemented as
    # identity (inference semantics).
    B, S, D_in = x.shape
    H = w1.shape[1]
    assert w2.shape == (H, 1), "kernel specialized to output_dim=1 (module default)"
    assert NEG_SLOPE > 1.0, "minimum-based LeakyReLU requires negative_slope > 1"
    M = B * S

    # x stays f32 in HBM (reshape is free on a contiguous array); only the tiny
    # resident operands are cast/reshaped in the wrapper.
    x2 = x.reshape(M, D_in)
    w1b = w1.astype(jnp.bfloat16)
    b1r = b1.reshape(1, H).astype(jnp.float32)
    w2r = w2.reshape(1, H).astype(jnp.float32)   # row layout for VPU projection
    b2s = b2.reshape(1, 1).astype(jnp.float32)   # SMEM scalar

    # Row tiling:
    #  * 16-row granule so tiny inputs (e.g. M=16) don't pad up to 128 dead rows.
    #  * For mid/large M, cap TM so the grid has >=2 roughly balanced "parallel"
    #    steps (lets v7x shard across both TensorCores).
    TM = min(tm, _round_up(M, 16))
    if M >= 256:
        TM = min(TM, _round_up(pl.cdiv(M, 2), 128))
    grid = (pl.cdiv(M, TM),)   # partial last block is masked by Pallas

    out = pl.pallas_call(
        net_kernel,
        out_shape=jax.ShapeDtypeStruct((M, 1), jnp.float32),
        grid_spec=pltpu.PrefetchScalarGridSpec(
            num_scalar_prefetch=0,
            grid=grid,
            in_specs=[
                pl.BlockSpec((TM, D_in), lambda i: (i, 0)),   # x: tiled over M
                pl.BlockSpec((D_in, H), lambda i: (0, 0)),    # w1: resident
                pl.BlockSpec((1, H), lambda i: (0, 0)),       # b1: resident
                pl.BlockSpec((1, H), lambda i: (0, 0)),       # w2 row: resident
                pl.BlockSpec(memory_space=pltpu.MemorySpace.SMEM),  # b2 scalar
            ],
            out_specs=pl.BlockSpec((TM, 1), lambda i: (i, 0)),
        ),
        compiler_params=pltpu.CompilerParams(
            # "parallel" lets v7x shard the M tiles across its 2 TensorCores.
            dimension_semantics=("parallel",),
            vmem_limit_bytes=32 * 1024 * 1024,
        ),
    )(x2, w1b, b1r, w2r, b2s)

    return out.reshape(B, S, 1)


def init_params(key, d_in, hidden, d_out):
    """Deterministic init mirroring Net._weight_init.

    Linear weights: kaiming_normal_(a=0.1, mode='fan_in', nonlinearity='leaky_relu')
      -> std = sqrt(2 / (1 + a^2)) / sqrt(fan_in)
    Biases: PyTorch nn.Linear default, U(-1/sqrt(fan_in), 1/sqrt(fan_in)).
    Weights returned pre-transposed to (in, out).
    """
    k1, k2, k3, k4 = jax.random.split(key, 4)
    gain = math.sqrt(2.0 / (1.0 + 0.1 ** 2))

    std1 = gain / math.sqrt(d_in)
    w1 = jax.random.normal(k1, (d_in, hidden), jnp.float32) * std1
    bound1 = 1.0 / math.sqrt(d_in)
    b1 = jax.random.uniform(k2, (1, hidden), jnp.float32, -bound1, bound1)

    std2 = gain / math.sqrt(hidden)
    w2 = jax.random.normal(k3, (hidden, d_out), jnp.float32) * std2
    bound2 = 1.0 / math.sqrt(hidden)
    b2 = jax.random.uniform(k4, (1, d_out), jnp.float32, -bound2, bound2)
    return w1, b1, w2, b2


def net_ref(x, w1, b1, w2, b2, *, match_kernel_precision=False):
    """Pure-JAX reference. If match_kernel_precision, mimic the bf16 first matmul."""
    if match_kernel_precision:
        h = jnp.dot(x.astype(jnp.bfloat16), w1.astype(jnp.bfloat16),
                    preferred_element_type=jnp.float32) + b1
    else:
        h = x @ w1 + b1
    h = jnp.where(h >= 0.0, h, NEG_SLOPE * h)
    return h @ w2 + b2


if __name__ == "__main__":
    B, S = 2, 8           # batch, sequence
    D_IN = 32             # input_dim
    HIDDEN = 256          # layers=(256,)
    D_OUT = 1             # output_dim

    key = jax.random.PRNGKey(0)
    kx, kp = jax.random.split(key)
    x = jax.random.normal(kx, (B, S, D_IN), jnp.float32)
    w1, b1, w2, b2 = init_params(kp, D_IN, HIDDEN, D_OUT)

    out = net_forward(x, w1, b1, w2, b2)
    out = jax.block_until_ready(out)
    assert out.shape == (B, S, D_OUT), out.shape

    # Tight check against a reference that matches the kernel's bf16/f32 precision.
    ref_bf16 = net_ref(x, w1, b1, w2, b2, match_kernel_precision=True)
    assert jnp.allclose(out, ref_bf16, rtol=1e-3, atol=1e-3), "mismatch vs bf16-matched reference"

    # Loose sanity check against the full-f32 reference (bf16 first matmul).
    ref = net_ref(x, w1, b1, w2, b2)
    assert jnp.allclose(out, ref, rtol=5e-2, atol=5e-1), "mismatch vs f32 reference"

    print("KERNEL_OK")
</pallas_src>

<mosaic_0001>
module attributes {stable_mosaic.version = 11 : i64} {
  func.func @net_kernel(%arg0: i32, %arg1: memref<16x32xf32, #tpu.memory_space<vmem>>, %arg2: memref<32x256xbf16, #tpu.memory_space<vmem>>, %arg3: memref<1x256xf32, #tpu.memory_space<vmem>>, %arg4: memref<1x256xf32, #tpu.memory_space<vmem>>, %arg5: memref<1x1xf32, #tpu.memory_space<smem>>, %arg6: memref<16x1xf32, #tpu.memory_space<vmem>>) attributes {dimension_semantics = [#tpu.dimension_semantics<parallel>], iteration_bounds = array<i64: 1>, scalar_prefetch = 0 : i64, scratch_operands = 0 : i64, tpu.core_type = #tpu.core_type<tc>, window_params = [{transform_indices = @transform_0, window_bounds = array<i64: 16, 32>}, {pipeline_mode = #tpu.pipeline_mode<synchronous>, transform_indices = @transform_1, window_bounds = array<i64: 32, 256>}, {pipeline_mode = #tpu.pipeline_mode<synchronous>, transform_indices = @transform_2, window_bounds = array<i64: 1, 256>}, {pipeline_mode = #tpu.pipeline_mode<synchronous>, transform_indices = @transform_3, window_bounds = array<i64: 1, 256>}, {transform_indices = @transform_4, window_bounds = array<i64: 1, 1>}, {transform_indices = @transform_5, window_bounds = array<i64: 16, 1>}]} {
    %c0 = arith.constant 0 : index
    %c0_0 = arith.constant 0 : index
    %0 = vector.load %arg1[%c0, %c0_0] : memref<16x32xf32, #tpu.memory_space<vmem>>, vector<16x32xf32>
    %1 = arith.truncf %0 : vector<16x32xf32> to vector<16x32xbf16>
    %c0_1 = arith.constant 0 : index
    %c0_2 = arith.constant 0 : index
    %2 = vector.load %arg2[%c0_1, %c0_2] : memref<32x256xbf16, #tpu.memory_space<vmem>>, vector<32x256xbf16>
    %cst = arith.constant dense<0.000000e+00> : vector<16x256xf32>
    %3 = tpu.matmul %1, %2, %cst {dimension_numbers = #tpu.dot_dimension_numbers<[1], [0], [0], [1], [0, 0, 1, 1], [], []>} : vector<16x32xbf16>, vector<32x256xbf16>, vector<16x256xf32> -> vector<16x256xf32>
    %c0_3 = arith.constant 0 : index
    %c0_4 = arith.constant 0 : index
    %4 = vector.load %arg3[%c0_3, %c0_4] : memref<1x256xf32, #tpu.memory_space<vmem>>, vector<1x256xf32>
    %5 = vector.broadcast %4 : vector<1x256xf32> to vector<16x256xf32>
    %6 = arith.addf %3, %5 : vector<16x256xf32>
    %cst_5 = arith.constant 9.100000e+00 : f32
    %7 = vector.broadcast %cst_5 : f32 to vector<16x256xf32>
    %8 = arith.mulf %7, %6 : vector<16x256xf32>
    %9 = arith.minimumf %6, %8 : vector<16x256xf32>
    %c0_6 = arith.constant 0 : index
    %c0_7 = arith.constant 0 : index
    %10 = vector.load %arg4[%c0_6, %c0_7] : memref<1x256xf32, #tpu.memory_space<vmem>>, vector<1x256xf32>
    %11 = vector.broadcast %10 : vector<1x256xf32> to vector<16x256xf32>
    %12 = arith.mulf %9, %11 : vector<16x256xf32>
    %cst_8 = arith.constant dense<0.000000e+00> : vector<16xf32>
    %13 = vector.multi_reduction <add>, %12, %cst_8 [1] : vector<16x256xf32> to vector<16xf32>
    %14 = vector.shape_cast %13 : vector<16xf32> to vector<16x1xf32>
    %c0_9 = arith.constant 0 : index
    %c0_10 = arith.constant 0 : index
    %15 = memref.load %arg5[%c0_9, %c0_10] : memref<1x1xf32, #tpu.memory_space<smem>>
    %16 = vector.broadcast %15 : f32 to vector<16x1xf32>
    %17 = arith.addf %14, %16 : vector<16x1xf32>
    %c0_11 = arith.constant 0 : index
    %c0_12 = arith.constant 0 : index
    %18 = vector.load %arg6[%c0_11, %c0_12] : memref<16x1xf32, #tpu.memory_space<vmem>>, vector<16x1xf32>
    tpu.vector_store %arg6[%c0_11, %c0_12], %17 {strides = array<i32>} : memref<16x1xf32, #tpu.memory_space<vmem>>, vector<16x1xf32>,
    return
  }
  func.func @transform_0(%arg0: i32) -> (i32, i32) {
    %c0_i32 = arith.constant 0 : i32
    %c0_i32_0 = arith.constant 0 : i32
    return %arg0, %c0_i32 : i32, i32
  }
  func.func @transform_1(%arg0: i32) -> (i32, i32) {
    %c0_i32 = arith.constant 0 : i32
    %c0_i32_0 = arith.constant 0 : i32
    %c0_i32_1 = arith.constant 0 : i32
    return %c0_i32, %c0_i32_0 : i32, i32
  }
  func.func @transform_2(%arg0: i32) -> (i32, i32) {
    %c0_i32 = arith.constant 0 : i32
    %c0_i32_0 = arith.constant 0 : i32
    %c0_i32_1 = arith.constant 0 : i32
    return %c0_i32, %c0_i32_0 : i32, i32
  }
  func.func @transform_3(%arg0: i32) -> (i32, i32) {
    %c0_i32 = arith.constant 0 : i32
    %c0_i32_0 = arith.constant 0 : i32
    %c0_i32_1 = arith.constant 0 : i32
    return %c0_i32, %c0_i32_0 : i32, i32
  }
  func.func @transform_4(%arg0: i32) -> (i32, i32) {
    %c0_i32 = arith.constant 0 : i32
    %c0_i32_0 = arith.constant 0 : i32
    %c0_i32_1 = arith.constant 0 : i32
    return %c0_i32, %c0_i32_0 : i32, i32
  }
  func.func @transform_5(%arg0: i32) -> (i32, i32) {
    %c0_i32 = arith.constant 0 : i32
    %c0_i32_0 = arith.constant 0 : i32
    return %arg0, %c0_i32 : i32, i32
  }
}

</mosaic_0001>

<bundles_post_ra>
// kernel: tpu_custom_call.1
= control target key start
LH: loop header
LB: loop body
LE: loop exit
PB: predicated region body
PF: predicated region fallthrough
CT: control target
= control target key end

     0   :  { %11 = vsyncpa [#allocation4], 0  ;;  %s289_s0 = inlined_call_operand.hbm [shape: f32[16,32], index: 0, kind: input, shape index: {}]   ;;  %s290_s1 = inlined_call_operand.hbm [shape: bf16[32,256], index: 1, kind: input, shape index: {}]   ;;  %s291_s2 = inlined_call_operand.vmem [shape: f32[1,256], index: 2, kind: input, shape index: {}]   ;;  %s292_s3 = inlined_call_operand.vmem [shape: f32[1,256], index: 3, kind: input, shape index: {}]   ;;  %s293_s4 = inlined_call_operand.<no memory space> [shape: f32[1,1], index: 4, kind: input, shape index: {}]   ;;  %s294_s5 = inlined_call_operand.vmem [shape: f32[16,1], index: 5, kind: output, shape index: {}]  }
   0x1   :  { %s17_s20 = sshll.u32 %s289_s0, 4  ;;  %s18_s20 = int_to_ptr.hbm [resolvable:$true] %s17_s20 }
   0x2   :  { %12 = vsyncpa [#allocation6], 0  ;;  %s234_s21 = smov [#allocation3]   ;;  %s30_s25 = sshll.u32 %s290_s1, 4  ;;  %s31_s25 = int_to_ptr.hbm [resolvable:$true] %s30_s25 }
   0x3   :  { %s19_s22 = sshll.u32 %s234_s21, 4  ;;  %s235_s26 = smov 128   ;;  %s20_s22 = int_to_ptr.vmem [resolvable:$true] %s19_s22 }
   0x4   :  { %s236_s27 = smov 8   ;;  %s237_s28 = smov [#allocation5]  }
   0x5   :  { %25 = dma.hbm_to_vmem [thread:$0]  %s18_s20, 256, %s20_s22, [#allocation4], %s235_s26, %s235_s26, %s236_s27  }
   0x6   :  { %s32_s29 = sshll.u32 %s237_s28, 4  ;;  %s33_s29 = int_to_ptr.vmem [resolvable:$true] %s32_s29 }
   0x7   :  { %38 = dma.hbm_to_vmem [thread:$0]  %s31_s25, 512, %s33_s29, [#allocation6], %s235_s26, %s235_s26, %s236_s27  }
   0x8   :  { %230 = dma.done.wait [#allocation4], 256  }
   0x9   :  { %231 = vsyncadd [#allocation4], 4294967040 }
   0xa   :  { %232 = dma.done.wait [#allocation6], 512  }
   0xb   :  { %233 = vsyncadd [#allocation6], 4294966784  ;;  %v166_v0 = vld [vmem:[#allocation5 + $0x10] sm:$0xf]  ;;  %v177_v1 = vld [vmem:[#allocation5 + $0x14] sm:$0xf0]  ;;  %v144_v43 = vstv %s293_s4 }
   0xc   :  { %v176_v2 = vld [vmem:[#allocation5 + $0x14] sm:$0xf]  ;;  %v167_v3 = vor.u32 %v177_v1, %v166_v0  ;;  %v168_v4 = vld [vmem:[#allocation5 + $0x18] sm:$0xf0]  ;;  %v158_v5 = vld [vmem:[#allocation5] sm:$0xf] }
   0xd   :  { %v175_v6 = vld [vmem:[#allocation5 + $0x4] sm:$0xf0]  ;;  %v171_v7 = vor.u32 %v176_v2, %v168_v4  ;;  %v174_v8 = vld [vmem:[#allocation5 + $0x4] sm:$0xf]  ;;  %v160_v9 = vld [vmem:[#allocation5 + $0x8] sm:$0xf0] }
   0xe   :  { %97 = vmatpush.bf16.msra.mxu0 %v167_v3  ;;  %v159_v10 = vor.u32 %v175_v6, %v158_v5  ;;  %v54_v11 = vld [vmem:[#allocation3] sm:$0xff]  ;;  %v55_v12 = vld [vmem:[#allocation3 + $0x8] sm:$0xff]  ;;  %v163_v13 = vor.u32 %v174_v8, %v160_v9  ;;  %vm87_vm0 = vcmask 261120   ;;  %vm147_vm1 = vcmask 7168  }
   0xf   :  { %111 = vmatpush.bf16.msra.mxu1 %v171_v7  ;;  %v56_v14 = vpack.c.bf16 %v55_v12, %v54_v11  ;;  %v61_v15 = vld [vmem:[%s291_s2] sm:$0x3] }
  0x10   :  { %v63_v16 = vperm.slane %v61_v15, 0  ;;  %v64_v17 = vperm.slane %v61_v15, 1  ;;  %v127_v19 = vld [vmem:[%s292_s3] sm:$0x3] }
  0x11   :  { %v129_v24 = vperm.slane %v127_v19, 0  ;;  %v130_v26 = vperm.slane %v127_v19, 1 }
  0x12   :  { %98 = vmatpush.bf16.msra.mxu0 %v159_v10 }
  0x13   :  { %112 = vmatpush.bf16.msra.mxu1 %v163_v13 }
  0x15   :  { %172 = vmatmul.msk.bf16.vlgmr.msra.gmra.mxu0 %vm87_vm0, %v56_v14 }
  0x16   :  { %173 = vmatmul.msk.bf16.vlgmr.msra.gmra.mxu1 %vm87_vm0, %v56_v14 }
  0x92   :  { %v100_v18 = vpop.f32.mrf.mxu0 }
  0x93   :  { %v101_v20 = vadd.f32 %v100_v18, %v63_v16  ;;  %v114_v21 = vpop.f32.mrf.mxu1 }
  0x94   :  { %v115_v22 = vadd.f32 %v114_v21, %v64_v17 }
  0x95   :  { %v119_v23 = vmul.f32 9.1, %v101_v20 }
  0x96   :  { %v120_v25 = vmul.f32 9.1, %v115_v22 }
  0x97   :  { %v123_v27 = vmin.f32 %v101_v20, %v119_v23 }
  0x98   :  { %v124_v28 = vmin.f32 %v115_v22, %v120_v25 }
  0x99   :  { %v133_v29 = vmul.f32 %v129_v24, %v123_v27 }
  0x9a   :  { %v102_v30 = vpop.f32.mrf.mxu0  ;;  %v134_v31 = vmul.f32 %v130_v26, %v124_v28 }
  0x9b   :  { %v103_v32 = vadd.f32 %v102_v30, %v63_v16  ;;  %v116_v33 = vpop.f32.mrf.mxu1 }
  0x9c   :  { %v117_v34 = vadd.f32 %v116_v33, %v64_v17  ;;  %v137_v35 = vadd.f32 %v134_v31, %v133_v29 }
  0x9d   :  { %v121_v36 = vmul.f32 9.1, %v103_v32 }
  0x9e   :  { %v122_v37 = vmul.f32 9.1, %v117_v34  ;;  %138 = vadd.xlane.f32.xlu0 %v137_v35 }
  0x9f   :  { %v125_v38 = vmin.f32 %v103_v32, %v121_v36 }
  0xa0   :  { %v126_v39 = vmin.f32 %v117_v34, %v122_v37 }
  0xa1   :  { %v135_v40 = vmul.f32 %v129_v24, %v125_v38 }
  0xa2   :  { %v136_v41 = vmul.f32 %v130_v26, %v126_v39 }
  0xa4   :  { %v140_v42 = vadd.f32 %v136_v41, %v135_v40 }
  0xa6   :  { %141 = vadd.xlane.f32.xlu0 %v140_v42 }
 0x111   :  { %v139_v44 = vpop.xlane.xlu0 %138 }
 0x112   :  { %v145_v45 = vadd.f32 %v144_v43, %v139_v44 }
 0x114   :  { %148 = vst.msk [vmem:[%s294_s5] sm:$0xff] %vm147_vm1, %v145_v45 }
 0x119   :  { %v142_v46 = vpop.xlane.xlu0 %141 }
 0x11a   :  { %v146_v47 = vadd.f32 %v144_v43, %v142_v46 }
 0x11c   :  { %149 = vst.msk [vmem:[%s294_s5 + $0x8] sm:$0xff] %vm147_vm1, %v146_v47 }
 0x11d   :  { %154 = vsyncpa [#allocation4], 1 }
 0x11e   :  { %155 = vsyncpa [#allocation6], 1 }

</bundles_post_ra>
